<compile_context>
chip_gen: v7x
topology: tpu7x:2x2x1
jax: 0.10.0
libtpu: 0.0.40
codegen_flags: <defaults>
</compile_context>

<pallas_src>
import functools

import jax
import jax.numpy as jnp
from jax.experimental import pallas as pl
from jax.experimental.pallas import tpu as pltpu


def _round_up(x, m):
    return (x + m - 1) // m * m


# ----------------------------- chip-gated tiling config -----------------------------

_CFG_CACHE = None


def _detect_cfg():
    vmem_bytes = None
    try:
        vmem_bytes = int(pltpu.get_tpu_info().vmem_capacity_bytes)
    except Exception:
        try:
            kind = jax.devices()[0].device_kind.lower()
            vmem_bytes = 64 * 1024 * 1024 if "7" in kind else 128 * 1024 * 1024
        except Exception:
            vmem_bytes = 64 * 1024 * 1024
    if vmem_bytes <= 64 * 1024 * 1024:
        # v7x-class: 64 MiB VMEM / TensorCore, 2 TCs -> modest budget, keep 2nd core busy.
        return {"vmem_limit": 40 * 1024 * 1024, "max_tm": 256, "max_tn": 256,
                "max_tk": 512, "two_core": True}
    # v5e / v6e: 128 MiB VMEM, 1 TC -> bigger tiles, fewer grid steps.
    return {"vmem_limit": 64 * 1024 * 1024, "max_tm": 256, "max_tn": 512,
            "max_tk": 1024, "two_core": False}


def _get_cfg():
    global _CFG_CACHE
    if _CFG_CACHE is None:
        _CFG_CACHE = _detect_cfg()
    return _CFG_CACHE


def _select_tiles(M, Kp, Np):
    cfg = _get_cfg()
    two_core = cfg["two_core"]
    # Tiny-M GEMMs (layer3/4, deconvs at small spatial): launch-bound -> one-shot grid.
    if M <= 64 and Kp * Np <= 4 * 1024 * 1024:
        TM = min(_round_up(M, 16), cfg["max_tm"])
        TK = Kp
        TN = Np
        if two_core and Np % 256 == 0:
            TN = Np // 2                       # give the second TensorCore a block
        return TM, TN, TK
    TM = min(cfg["max_tm"], _round_up(M, 16))
    TN = 128
    for cand in (512, 256):
        if cand <= cfg["max_tn"] and Np % cand == 0:
            TN = cand
            break
    TK = 128
    for cand in (1024, 512, 256):              # 256-multiples only (MXU-friendly)
        if cand <= cfg["max_tk"] and Kp % cand == 0:
            TK = cand
            break
    if two_core:
        m_blocks = _round_up(M, TM) // TM
        if m_blocks == 1 and Np // TN == 1:
            if TN >= 256:
                TN //= 2
            elif TM >= 32:
                TM = _round_up(TM // 2, 16)
    return TM, TN, TK


# ----------------------------- Pallas kernels -----------------------------

def _mm_kernel(a_ref, b_ref, bi_ref, o_ref, acc_ref, *, apply_relu):
    """Tiled matmul (bf16 in, f32 acc) with fused bias (+ optional ReLU), bf16 store."""
    k = pl.program_id(2)

    @pl.when(k == 0)
    def _():
        acc_ref[...] = jnp.zeros_like(acc_ref)

    acc_ref[...] += jnp.dot(a_ref[...], b_ref[...],
                            preferred_element_type=jnp.float32)

    @pl.when(k == pl.num_programs(2) - 1)
    def _():
        out = acc_ref[...] + bi_ref[...]
        if apply_relu:
            out = jnp.maximum(out, 0.0)
        o_ref[...] = out.astype(o_ref.dtype)


def _mm_res_kernel(a_ref, b_ref, bi_ref, r_ref, o_ref, acc_ref, *, apply_relu):
    """Same as _mm_kernel but with a fused bf16 residual (upcast in the epilogue)."""
    k = pl.program_id(2)

    @pl.when(k == 0)
    def _():
        acc_ref[...] = jnp.zeros_like(acc_ref)

    acc_ref[...] += jnp.dot(a_ref[...], b_ref[...],
                            preferred_element_type=jnp.float32)

    @pl.when(k == pl.num_programs(2) - 1)
    def _():
        out = acc_ref[...] + bi_ref[...] + r_ref[...].astype(jnp.float32)
        if apply_relu:
            out = jnp.maximum(out, 0.0)
        o_ref[...] = out.astype(o_ref.dtype)


def _bmm_kernel(a_ref, b_ref, bi_ref, o_ref, acc_ref, *, apply_relu):
    """Batched (parity-axis) matmul for the fused 4x4/s2 deconv; bf16 store."""
    k = pl.program_id(3)

    @pl.when(k == 0)
    def _():
        acc_ref[...] = jnp.zeros_like(acc_ref)

    acc_ref[...] += jnp.dot(a_ref[0], b_ref[0],
                            preferred_element_type=jnp.float32)

    @pl.when(k == pl.num_programs(3) - 1)
    def _():
        out = acc_ref[...] + bi_ref[...]
        if apply_relu:
            out = jnp.maximum(out, 0.0)
        o_ref[...] = out.astype(o_ref.dtype)[None]


def _tapmax_kernel(x_ref, o_ref):
    # x_ref: (T, TL) stacked taps over a lane-dense flattened view.
    o_ref[...] = jnp.max(x_ref[...], axis=0, keepdims=True)


# ----------------------------- GEMM wrapper -----------------------------

def matmul_bias(a, b16, bias, residual=None, *, apply_relu, out_dtype=jnp.bfloat16):
    """out = relu?(a @ b16 + bias [+ residual]); bf16 operands, f32 accumulation.

    b16 is the pre-folded / pre-padded bf16 weight matrix (Kp, Np); bias is the
    un-padded f32 BN bias (N,)."""
    M, K = a.shape
    Kp, Np = b16.shape
    Nv = bias.shape[0]

    TM, TN, TK = _select_tiles(M, Kp, Np)
    Mp = _round_up(M, TM)

    a16 = a.astype(jnp.bfloat16)
    if (Mp, Kp) != (M, K):
        a16 = jnp.pad(a16, ((0, Mp - M), (0, Kp - K)))
    bi = jnp.pad(bias.astype(jnp.float32), (0, Np - Nv)).reshape(1, Np)

    grid = (Mp // TM, Np // TN, Kp // TK)
    in_specs = [
        pl.BlockSpec((TM, TK), lambda i, j, k: (i, k)),
        pl.BlockSpec((TK, TN), lambda i, j, k: (k, j)),
        pl.BlockSpec((1, TN), lambda i, j, k: (0, j)),
    ]
    args = [a16, b16, bi]
    if residual is not None:
        r16 = residual.astype(jnp.bfloat16)
        if (Mp, Np) != (M, Nv):
            r16 = jnp.pad(r16, ((0, Mp - M), (0, Np - Nv)))
        in_specs.append(pl.BlockSpec((TM, TN), lambda i, j, k: (i, j)))
        args.append(r16)
        kernel = functools.partial(_mm_res_kernel, apply_relu=apply_relu)
    else:
        kernel = functools.partial(_mm_kernel, apply_relu=apply_relu)

    out = pl.pallas_call(
        kernel,
        out_shape=jax.ShapeDtypeStruct((Mp, Np), out_dtype),
        grid_spec=pltpu.PrefetchScalarGridSpec(
            num_scalar_prefetch=0,
            grid=grid,
            in_specs=in_specs,
            out_specs=pl.BlockSpec((TM, TN), lambda i, j, k: (i, j)),
            scratch_shapes=[pltpu.VMEM((TM, TN), jnp.float32)],
        ),
        compiler_params=pltpu.CompilerParams(
            dimension_semantics=("parallel", "parallel", "arbitrary"),
            vmem_limit_bytes=_get_cfg()["vmem_limit"],
        ),
    )(*args)
    return out[:M, :Nv]


# ----------------------------- conv / deconv / pool wrappers -----------------------------

@functools.partial(jax.jit, static_argnames=("kh", "kw", "stride", "padding",
                                              "apply_relu", "out_dtype"))
def conv2d(x, b_packed, bias, residual=None, *, kh, kw, stride, padding,
           apply_relu, out_dtype=jnp.bfloat16):
    """x: (N,H,W,Cin) NHWC bf16; b_packed: pre-folded bf16 (Kp,Np) weight matrix."""
    n, h, wdim, cin = x.shape
    cout = bias.shape[0]
    x = x.astype(jnp.bfloat16)

    if kh == 1 and kw == 1 and padding == 0:
        if stride != 1:
            x = x[:, ::stride, ::stride, :]
        oh, ow = x.shape[1], x.shape[2]
        a = x.reshape(n * oh * ow, cin)
    else:
        oh = (h + 2 * padding - kh) // stride + 1
        ow = (wdim + 2 * padding - kw) // stride + 1
        xp = jnp.pad(x, ((0, 0), (padding, padding), (padding, padding), (0, 0)))
        cols = [xp[:, ih:ih + stride * oh:stride, iw:iw + stride * ow:stride, :]
                for ih in range(kh) for iw in range(kw)]
        patches = jnp.stack(cols, axis=3)                 # (N,OH,OW,KH*KW,Cin) bf16
        a = patches.reshape(n * oh * ow, kh * kw * cin)

    res2d = residual.reshape(n * oh * ow, cout) if residual is not None else None
    out = matmul_bias(a, b_packed, bias, res2d, apply_relu=apply_relu,
                      out_dtype=out_dtype)
    return out.reshape(n, oh, ow, cout)


# Sub-pixel decomposition of 4x4 / stride-2 / pad-1 transposed conv: output parity
# (py,px) receives kernel rows/cols _TAP_K[p] from input offsets p+0, p+1 (in xp = pad-1).
_TAP_K = {0: (3, 1), 1: (2, 0)}


@functools.partial(jax.jit, static_argnames=("apply_relu",))
def conv_transpose2d(x, b4, bias, *, apply_relu):
    """Fused deconv: the 4 parity GEMMs run as ONE batched pallas_call.

    b4: (4, Kp, Np) pre-folded bf16 weights (one slab per output parity)."""
    n, h, wdim, cin = x.shape
    cout = bias.shape[0]
    K = 4 * cin
    _, Kp, Np = b4.shape

    x = x.astype(jnp.bfloat16)
    xp = jnp.pad(x, ((0, 0), (1, 1), (1, 1), (0, 0)))
    a_parts = []
    for py in (0, 1):
        for px in (0, 1):
            taps = [xp[:, py + di:py + di + h, px + dj:px + dj + wdim, :]
                    for di in (0, 1) for dj in (0, 1)]
            a_parts.append(jnp.stack(taps, axis=3).reshape(n * h * wdim, K))
    a4 = jnp.stack(a_parts, axis=0)                       # (4, M, 4*Cin) bf16

    M = n * h * wdim
    TM, TN, TK = _select_tiles(M, Kp, Np)
    Mp = _round_up(M, TM)
    if (Mp, Kp) != (M, K):
        a4 = jnp.pad(a4, ((0, 0), (0, Mp - M), (0, Kp - K)))
    bi = jnp.pad(bias.astype(jnp.float32), (0, Np - cout)).reshape(1, Np)

    grid = (4, Mp // TM, Np // TN, Kp // TK)
    out = pl.pallas_call(
        functools.partial(_bmm_kernel, apply_relu=apply_relu),
        out_shape=jax.ShapeDtypeStruct((4, Mp, Np), jnp.bfloat16),
        grid_spec=pltpu.PrefetchScalarGridSpec(
            num_scalar_prefetch=0,
            grid=grid,
            in_specs=[pl.BlockSpec((1, TM, TK), lambda p, i, j, k: (p, i, k)),
                      pl.BlockSpec((1, TK, TN), lambda p, i, j, k: (p, k, j)),
                      pl.BlockSpec((1, TN), lambda p, i, j, k: (0, j))],
            out_specs=pl.BlockSpec((1, TM, TN), lambda p, i, j, k: (p, i, j)),
            scratch_shapes=[pltpu.VMEM((TM, TN), jnp.float32)],
        ),
        compiler_params=pltpu.CompilerParams(
            dimension_semantics=("parallel", "parallel", "parallel", "arbitrary"),
            vmem_limit_bytes=_get_cfg()["vmem_limit"],
        ),
    )(a4, b4, bi)

    out = out[:, :M, :cout]                               # (4, M, Cout) bf16
    out = out.reshape(2, 2, n, h, wdim, cout)
    out = out.transpose(2, 3, 0, 4, 1, 5).reshape(n, 2 * h, 2 * wdim, cout)
    return out


def _tap_max(taps):
    """Lane-dense Pallas max over a small tap axis."""
    t = len(taps)
    shape = taps[0].shape
    dtype = taps[0].dtype
    L = 1
    for s in shape:
        L *= int(s)
    flat = jnp.stack(taps, axis=0).reshape(t, L)
    if L <= 65536:
        TL = _round_up(L, 128)
        Lp = TL
    else:
        TL = 65536
        Lp = _round_up(L, TL)
    if Lp != L:
        pad_val = float(jnp.finfo(dtype).min)
        flat = jnp.pad(flat, ((0, 0), (0, Lp - L)), constant_values=pad_val)
    out = pl.pallas_call(
        _tapmax_kernel,
        out_shape=jax.ShapeDtypeStruct((1, Lp), dtype),
        grid=(Lp // TL,),
        in_specs=[pl.BlockSpec((t, TL), lambda i: (0, i))],
        out_specs=pl.BlockSpec((1, TL), lambda i: (0, i)),
        compiler_params=pltpu.CompilerParams(dimension_semantics=("parallel",)),
    )(flat)
    return out[0, :L].reshape(shape)


@jax.jit
def maxpool_3x3_s2_p1(x):
    """Separable 3x3/s2/p1 max pool (W pass then H pass), bf16."""
    n, h, w, c = x.shape
    oh = (h + 2 - 3) // 2 + 1
    ow = (w + 2 - 3) // 2 + 1
    xp = jnp.pad(x, ((0, 0), (1, 1), (1, 1), (0, 0)), constant_values=-jnp.inf)
    cm = _tap_max([xp[:, :, j:j + 2 * ow:2, :] for j in range(3)])   # (N,H+2,OW,C)
    return _tap_max([cm[:, i:i + 2 * oh:2, :, :] for i in range(3)])  # (N,OH,OW,C)


# ----------------------------- parameters (pre-folded / pre-packed) -----------------------------

def _conv_w(key, cout, cin, kh, kw):
    fan = cin * kh * kw
    return jax.random.normal(key, (cout, cin, kh, kw), jnp.float32) / jnp.sqrt(fan)


def _deconv_w(key, cin, cout, kh, kw):
    fan = cin * kh * kw
    return jax.random.normal(key, (cin, cout, kh, kw), jnp.float32) / jnp.sqrt(fan)


def _make_bn(key, c, eps=1e-5):
    k1, k2, k3, k4 = jax.random.split(key, 4)
    gamma = 1.0 + 0.1 * jax.random.normal(k1, (c,), jnp.float32)
    beta = 0.1 * jax.random.normal(k2, (c,), jnp.float32)
    mean = 0.1 * jax.random.normal(k3, (c,), jnp.float32)
    var = 1.0 + 0.1 * jax.random.uniform(k4, (c,), jnp.float32)
    scale = gamma / jnp.sqrt(var + eps)
    bias = beta - mean * scale
    return scale, bias


def _pack_conv(w, scale, bias):
    """Fold BN scale into the (KH*KW*Cin, Cout) matrix, pad to 128-multiples, cast bf16."""
    cout, cin, kh, kw = w.shape
    K = kh * kw * cin
    wm = w.transpose(2, 3, 1, 0).reshape(K, cout) * scale[None, :]
    Kp, Np = _round_up(K, 128), _round_up(cout, 128)
    b16 = jnp.pad(wm, ((0, Kp - K), (0, Np - cout))).astype(jnp.bfloat16)
    return {"b": b16, "bias": bias.astype(jnp.float32)}


def _pack_deconv(w, scale, bias):
    """Per-parity (4*Cin, Cout) weight slabs for the sub-pixel deconv, stacked (4,Kp,Np)."""
    cin, cout = w.shape[0], w.shape[1]
    K = 4 * cin
    Kp, Np = _round_up(K, 128), _round_up(cout, 128)
    mats = []
    for py in (0, 1):
        for px in (0, 1):
            wsubs = [w[:, :, khi, kwi] for khi in _TAP_K[py] for kwi in _TAP_K[px]]
            m = jnp.concatenate(wsubs, axis=0) * scale[None, :]      # (4*Cin, Cout)
            mats.append(jnp.pad(m, ((0, Kp - K), (0, Np - cout))))
    b4 = jnp.stack(mats, axis=0).astype(jnp.bfloat16)                # (4, Kp, Np)
    return {"b4": b4, "bias": bias.astype(jnp.float32)}


def _init_block(key, inplanes, planes, stride, has_down):
    keys = jax.random.split(key, 8)
    w1 = _conv_w(keys[0], planes, inplanes, 1, 1)
    s1, b1 = _make_bn(keys[1], planes)
    w2 = _conv_w(keys[2], planes, planes, 3, 3)
    s2, b2 = _make_bn(keys[3], planes)
    w3 = _conv_w(keys[4], planes * 4, planes, 1, 1)
    s3, b3 = _make_bn(keys[5], planes * 4)
    p = {"c1": _pack_conv(w1, s1, b1),
         "c2": _pack_conv(w2, s2, b2),
         "c3": _pack_conv(w3, s3, b3),
         "stride": stride}
    if has_down:
        wd = _conv_w(keys[6], planes * 4, inplanes, 1, 1)
        sd, bd = _make_bn(keys[7], planes * 4)
        p["cd"] = _pack_conv(wd, sd, bd)
    return p


def init_params(key, n_joints):
    _get_cfg()                       # populate chip config eagerly
    keys = iter(jax.random.split(key, 64))
    params = {}
    w = _conv_w(next(keys), 64, 3, 7, 7)
    s, b = _make_bn(next(keys), 64)
    params["conv1"] = _pack_conv(w, s, b)

    inplanes = 64

    def make_layer(planes, blocks, stride):
        nonlocal inplanes
        layer = []
        for i in range(blocks):
            st = stride if i == 0 else 1
            has_down = (i == 0) and (st != 1 or inplanes != planes * 4)
            layer.append(_init_block(next(keys), inplanes, planes, st, has_down))
            inplanes = planes * 4
        return layer

    params["layer1"] = make_layer(64, 3, 1)
    params["layer2"] = make_layer(128, 4, 2)
    params["layer3"] = make_layer(256, 6, 2)
    params["layer4"] = make_layer(512, 3, 2)

    deconvs = []
    for _ in range(3):
        w = _deconv_w(next(keys), inplanes, 256, 4, 4)
        s, b = _make_bn(next(keys), 256)
        deconvs.append(_pack_deconv(w, s, b))
        inplanes = 256
    params["deconvs"] = deconvs

    wf = _conv_w(next(keys), n_joints, 256, 1, 1)
    bf = 0.1 * jax.random.normal(next(keys), (n_joints,), jnp.float32)
    params["final"] = _pack_conv(wf, jnp.ones((n_joints,), jnp.float32), bf)
    return params


# ----------------------------- forward pass -----------------------------

def _res_block(x, p):
    out = conv2d(x, p["c1"]["b"], p["c1"]["bias"],
                 kh=1, kw=1, stride=1, padding=0, apply_relu=True)
    out = conv2d(out, p["c2"]["b"], p["c2"]["bias"],
                 kh=3, kw=3, stride=p["stride"], padding=1, apply_relu=True)
    if "cd" in p:
        residual = conv2d(x, p["cd"]["b"], p["cd"]["bias"],
                          kh=1, kw=1, stride=p["stride"], padding=0, apply_relu=False)
    else:
        residual = x
    # conv3 + BN + residual add + ReLU fused into one GEMM epilogue (bf16 residual).
    out = conv2d(out, p["c3"]["b"], p["c3"]["bias"], residual=residual,
                 kh=1, kw=1, stride=1, padding=0, apply_relu=True)
    return out


def simple_baseline_forward(x_nchw, params):
    x = jnp.transpose(x_nchw, (0, 2, 3, 1)).astype(jnp.bfloat16)   # NCHW -> NHWC bf16
    x = conv2d(x, params["conv1"]["b"], params["conv1"]["bias"],
               kh=7, kw=7, stride=2, padding=3, apply_relu=True)
    x = maxpool_3x3_s2_p1(x)
    for layer in ("layer1", "layer2", "layer3", "layer4"):
        for p in params[layer]:
            x = _res_block(x, p)
    for dp in params["deconvs"]:
        x = conv_transpose2d(x, dp["b4"], dp["bias"], apply_relu=True)
    x = conv2d(x, params["final"]["b"], params["final"]["bias"],
               kh=1, kw=1, stride=1, padding=0, apply_relu=False,
               out_dtype=jnp.float32)
    return jnp.transpose(x, (0, 3, 1, 2))                          # NHWC -> NCHW


# ----------------------------- main -----------------------------

if __name__ == "__main__":
    key = jax.random.PRNGKey(0)
    kp, kx = jax.random.split(key)
    n_joints = 8
    params = init_params(kp, n_joints)
    x = jax.random.normal(kx, (2, 3, 32, 32), jnp.float32)   # NCHW, like PyTorch
    out = simple_baseline_forward(x, params)
    out = jax.block_until_ready(out)
    assert out.shape == (2, n_joints, 8, 8), out.shape
    assert bool(jnp.all(jnp.isfinite(out)))
    print("KERNEL_OK")
</pallas_src>

<mosaic_0001>
module attributes {stable_mosaic.version = 11 : i64} {
  func.func @_mm_kernel(%arg0: i32, %arg1: i32, %arg2: i32, %arg3: memref<256x256xbf16, #tpu.memory_space<vmem>>, %arg4: memref<256x128xbf16, #tpu.memory_space<vmem>>, %arg5: memref<1x128xf32, #tpu.memory_space<vmem>>, %arg6: memref<256x128xbf16, #tpu.memory_space<vmem>>, %arg7: memref<256x128xf32, #tpu.memory_space<vmem>>) attributes {dimension_semantics = [#tpu.dimension_semantics<parallel>, #tpu.dimension_semantics<parallel>, #tpu.dimension_semantics<arbitrary>], iteration_bounds = array<i64: 2, 1, 1>, scalar_prefetch = 0 : i64, scratch_operands = 1 : i64, tpu.core_type = #tpu.core_type<tc>, window_params = [{transform_indices = @transform_0, window_bounds = array<i64: 256, 256>}, {transform_indices = @transform_1, window_bounds = array<i64: 256, 128>}, {transform_indices = @transform_2, window_bounds = array<i64: 1, 128>}, {transform_indices = @transform_3, window_bounds = array<i64: 256, 128>}]} {
    %c0_i32 = arith.constant 0 : i32
    %0 = arith.cmpi eq, %arg2, %c0_i32 : i32
    %1 = arith.extui %0 : i1 to i32
    %c0_i32_0 = arith.constant 0 : i32
    %2 = arith.cmpi ne, %1, %c0_i32_0 : i32
    scf.if %2 {
      %cst_10 = arith.constant 0.000000e+00 : f32
      %12 = vector.broadcast %cst_10 : f32 to vector<256x128xf32>
      %c0_11 = arith.constant 0 : index
      %c0_12 = arith.constant 0 : index
      %13 = vector.load %arg7[%c0_11, %c0_12] : memref<256x128xf32, #tpu.memory_space<vmem>>, vector<256x128xf32>
      tpu.vector_store %arg7[%c0_11, %c0_12], %12 {strides = array<i32>} : memref<256x128xf32, #tpu.memory_space<vmem>>, vector<256x128xf32>,
    } else {
    }
    %c0 = arith.constant 0 : index
    %c0_1 = arith.constant 0 : index
    %3 = vector.load %arg7[%c0, %c0_1] : memref<256x128xf32, #tpu.memory_space<vmem>>, vector<256x128xf32>
    %c0_2 = arith.constant 0 : index
    %c0_3 = arith.constant 0 : index
    %4 = vector.load %arg3[%c0_2, %c0_3] : memref<256x256xbf16, #tpu.memory_space<vmem>>, vector<256x256xbf16>
    %c0_4 = arith.constant 0 : index
    %c0_5 = arith.constant 0 : index
    %5 = vector.load %arg4[%c0_4, %c0_5] : memref<256x128xbf16, #tpu.memory_space<vmem>>, vector<256x128xbf16>
    %cst = arith.constant dense<0.000000e+00> : vector<256x128xf32>
    %6 = tpu.matmul %4, %5, %cst {dimension_numbers = #tpu.dot_dimension_numbers<[1], [0], [0], [1], [0, 0, 1, 1], [], []>} : vector<256x256xbf16>, vector<256x128xbf16>, vector<256x128xf32> -> vector<256x128xf32>
    %7 = arith.addf %3, %6 : vector<256x128xf32>
    %c0_6 = arith.constant 0 : index
    %c0_7 = arith.constant 0 : index
    %8 = vector.load %arg7[%c0_6, %c0_7] : memref<256x128xf32, #tpu.memory_space<vmem>>, vector<256x128xf32>
    tpu.vector_store %arg7[%c0_6, %c0_7], %7 {strides = array<i32>} : memref<256x128xf32, #tpu.memory_space<vmem>>, vector<256x128xf32>,
    %c0_i32_8 = arith.constant 0 : i32
    %9 = arith.cmpi eq, %arg2, %c0_i32_8 : i32
    %10 = arith.extui %9 : i1 to i32
    %c0_i32_9 = arith.constant 0 : i32
    %11 = arith.cmpi ne, %10, %c0_i32_9 : i32
    scf.if %11 {
      %c0_10 = arith.constant 0 : index
      %c0_11 = arith.constant 0 : index
      %12 = vector.load %arg7[%c0_10, %c0_11] : memref<256x128xf32, #tpu.memory_space<vmem>>, vector<256x128xf32>
      %c0_12 = arith.constant 0 : index
      %c0_13 = arith.constant 0 : index
      %13 = vector.load %arg5[%c0_12, %c0_13] : memref<1x128xf32, #tpu.memory_space<vmem>>, vector<1x128xf32>
      %14 = vector.broadcast %13 : vector<1x128xf32> to vector<256x128xf32>
      %15 = arith.addf %12, %14 : vector<256x128xf32>
      %cst_14 = arith.constant 0.000000e+00 : f32
      %16 = vector.broadcast %cst_14 : f32 to vector<256x128xf32>
      %17 = arith.maximumf %15, %16 : vector<256x128xf32>
      %18 = arith.truncf %17 : vector<256x128xf32> to vector<256x128xbf16>
      %c0_15 = arith.constant 0 : index
      %c0_16 = arith.constant 0 : index
      %19 = vector.load %arg6[%c0_15, %c0_16] : memref<256x128xbf16, #tpu.memory_space<vmem>>, vector<256x128xbf16>
      tpu.vector_store %arg6[%c0_15, %c0_16], %18 {strides = array<i32>} : memref<256x128xbf16, #tpu.memory_space<vmem>>, vector<256x128xbf16>,
    } else {
    }
    return
  }
  func.func @transform_0(%arg0: i32, %arg1: i32, %arg2: i32) -> (i32, i32) {
    %c0_i32 = arith.constant 0 : i32
    return %arg0, %arg2 : i32, i32
  }
  func.func @transform_1(%arg0: i32, %arg1: i32, %arg2: i32) -> (i32, i32) {
    %c0_i32 = arith.constant 0 : i32
    return %arg2, %arg1 : i32, i32
  }
  func.func @transform_2(%arg0: i32, %arg1: i32, %arg2: i32) -> (i32, i32) {
    %c0_i32 = arith.constant 0 : i32
    %c0_i32_0 = arith.constant 0 : i32
    return %c0_i32, %arg1 : i32, i32
  }
  func.func @transform_3(%arg0: i32, %arg1: i32, %arg2: i32) -> (i32, i32) {
    %c0_i32 = arith.constant 0 : i32
    return %arg0, %arg1 : i32, i32
  }
}

</mosaic_0001>

<bundles_post_ra>
// kernel: conv2d.1
= control target key start
LH: loop header
LB: loop body
LE: loop exit
PB: predicated region body
PF: predicated region fallthrough
CT: control target
= control target key end

     0   :  { %8 = vsyncpa [#allocation4], 0  ;;  %s2333_s0 = inlined_call_operand.hbm [shape: bf16[512,256], index: 0, kind: input, shape index: {}]   ;;  %s2334_s1 = inlined_call_operand.hbm [shape: bf16[256,128], index: 1, kind: input, shape index: {}]   ;;  %s2335_s2 = inlined_call_operand.hbm [shape: f32[1,128], index: 2, kind: input, shape index: {}]   ;;  %s2336_s3 = inlined_call_operand.hbm [shape: bf16[512,128], index: 3, kind: output, shape index: {}]  }
   0x1   :  { %10 = vsyncpa [#allocation4 + $0x1], 0 }
   0x2   :  { %11 = vsyncpa [#allocation7], 0 }
   0x3   :  { %12 = vsyncpa [#allocation5], 0 }
   0x4   :  { %14 = vsyncpa [#allocation5 + $0x1], 0  ;;  %s1989_s12 = smov 0   ;;  %s1991_s13 = smov 0  }
   0x5   :  { %s1993_s14 = smov 0   ;;  %s1995_s15 = smov 0  }
   0x6   :  { %s1997_s16 = smov 0   ;;  %s1999_s17 = smov 0  }
   0x7 LB: > { %s1273_s18 = sadd.s32 4294967295, %s1957_s17   ;;  %s1274_s19 = sadd.s32 4294967294, %s1957_s17   ;;  %s1957_s17 = sphi %s1999_s17, %s20_s17   ;;  %s1953_s16 = sphi %s1997_s16, %s2358_s16   ;;  %s1949_s15 = sphi %s1995_s15, %s2357_s15   ;;  %s1945_s14 = sphi %s1993_s14, %s2356_s14   ;;  %s1941_s13 = sphi %s1991_s13, %s2355_s13   ;;  %s1937_s12 = sphi %s1989_s12, %s2354_s12  }
   0x8   : > { %p61_p0 = scmp.ne.s32.totalorder %s1941_s13, %s1937_s12  ;;  %p2023_p1 = scmp.eq.s32.totalorder %s1273_s18, 0 }
   0x9   : > { %p2027_p2 = scmp.eq.s32.totalorder %s1273_s18, 1  ;;  %p147_p3 = scmp.eq.s32.totalorder %s1274_s19, 1 }
   0xa   : > { %s2341_s20 = scalar_select %p2023_p1, 1, 0 }
   0xb   : > { %p2033_p4 = por %p2023_p1, %p61_p0  ;;  %p1275_p5 = scmp.ge.s32.totalorder %s1957_s17, 1 }
   0xc   : > { %p2038_p6 = por %p147_p3, %p61_p0  ;;  %p154_p7 = scmp.lt.s32.totalorder %s1957_s17, 3 }
   0xd   : > { %s2343_s22 = scalar_select %p2033_p4, 1, 0 }
   0xe   : > { %s2344_s23 = scalar_select %p2038_p6, 1, 0 }
   0xf   : > { %p2043_p8 = pnand %p1275_p5, %p154_p7  ;;  %s1959_s25 = smov [#allocation6]  }
  0x10   : > { %s170_s26 = sshll.u32 %s1959_s25, 4  ;;  %s1960_s28 = smov [#allocation8]   ;;  %s2047_s26 = int_to_ptr.vmem [resolvable:$true] %s170_s26 }
  0x11   : > { %p1644_p9 = pneg %p2043_p8  ;;  %s186_s29 = sshll.u32 %s1960_s28, 4  ;;  %s2058_s29 = int_to_ptr.vmem [resolvable:$true] %s186_s29 }
  0x12   : > { %s1785_s5 = scalar_lea.hbm %s2334_s1, 2048 }
  0x13   : > { %p2054_p11 = pnand %p1644_p9, %p2023_p1  ;;  %p1786_p12 = scmp.ne.s32.totalorder %s2334_s1, %s1785_s5 }
  0x14   : > { %p1792_p5 = scmp.lt.u32.totalorder %s1785_s5, %s2334_s1 }
  0x15   : > { %p1787_p13 = pneg %p2054_p11 }
  0x17   : > { %p1788_p0 = pnand %p1787_p13, %p1786_p12 }
  0x19   : > { %p1789_p3 = pneg %p1788_p0 }
  0x1b   : > { %p1794_p7 = pnand %p1792_p5, %p1789_p3 }
  0x1d   : > { %1797 = shalt.err (!%p1794_p7)
}
  0x1e   : > { %s1798_s10 = scalar_lea.vmem %s2047_s26, 2048  ;;  %p1806_p1 = scmp.lt.s32.totalorder %s2047_s26, %s2047_s26 }
  0x1f   : > { %p1799_p9 = scmp.ne.s32.totalorder %s2047_s26, %s1798_s10  ;;  %p1807_p12 = scmp.lt.s32.totalorder %s1798_s10, %s1798_s10 }
  0x21   : > { %p1801_p10 = pnand %p1799_p9, %p1787_p13  ;;  %p1808_p0 = por %p1807_p12, %p1806_p1 }
  0x23   : > { %p1802_p6 = pneg %p1801_p10 }
  0x25   : > { %p1809_p4 = pnand %p1808_p0, %p1802_p6 }
  0x27   : > { %1812 = shalt.err (!%p1809_p4)
}
  0x28   : > { %s1961_s11 = smov 64   ;;  %s1962_s18 = smov 4  }
  0x29   : > { %1647 = dma.hbm_to_vmem [thread:$0]  (!%p2054_p11), %s2334_s1, 2048, %s2047_s26, [#allocation7], %s1961_s11, %s1961_s11, %s1962_s18  }
  0x2a   : > { %s1813_s4 = scalar_lea.hbm %s2335_s2, 16 }
  0x2b   : > { %p1814_p1 = scmp.ne.s32.totalorder %s2335_s2, %s1813_s4  ;;  %p1820_p10 = scmp.lt.u32.totalorder %s1813_s4, %s2335_s2 }
  0x2d   : > { %p1816_p4 = pnand %p1814_p1, %p1787_p13 }
  0x2f   : > { %p1817_p6 = pneg %p1816_p4 }
  0x31   : > { %p1822_p3 = pnand %p1820_p10, %p1817_p6 }
  0x33   : > { %1825 = shalt.err (!%p1822_p3)
}
  0x34   : > { %s1826_s26 = scalar_lea.vmem %s2058_s29, 16  ;;  %s1833_s9 = scalar_lea.vmem %s2058_s29, 32 }
  0x35   : > { %p1827_p5 = scmp.ne.s32.totalorder %s2058_s29, %s1826_s26  ;;  %p1834_p12 = scmp.lt.s32.totalorder %s2058_s29, %s2058_s29 }
  0x36   : > { %p1835_p0 = scmp.lt.s32.totalorder %s1833_s9, %s1826_s26 }
  0x37   : > { %p1829_p7 = pnand %p1827_p5, %p1787_p13 }
  0x38   : > { %p1836_p1 = por %p1835_p0, %p1834_p12 }
  0x39   : > { %p1830_p9 = pneg %p1829_p7 }
  0x3b   : > { %p1837_p4 = pnand %p1836_p1, %p1830_p9 }
  0x3d   : > { %1840 = shalt.err (!%p1837_p4)
}
  0x3e   : > { %1650 = dma.hbm_to_vmem [thread:$0]  (!%p2054_p11), %s2335_s2, 16, %s2058_s29, [#allocation7]  }
  0x3f   : > { %s39_s18 = sadd.s32 1, %s1953_s16  ;;  %s48_s19 = sadd.s32 1, %s1945_s14 }
  0x40   : > { %p41_p13 = scmp.ge.s32.totalorder %s39_s18, 2  ;;  %p55_p6 = scmp.ne.s32.totalorder %s1945_s14, %s1941_s13 }
  0x41   : > { %p56_p10 = scmp.eq.s32.totalorder %s1957_s17, 0  ;;  %p1661_p3 = scmp.lt.s32.totalorder %s1957_s17, 2 }
  0x42   : > { %s2360_s18 = smov (%p41_p13, %s39_s18), 0  ;;  %p2123_p7 = por %p2027_p2, %p55_p6 }
  0x43   : > { %p57_p5 = por %p56_p10, %p55_p6  ;;  %s43_s25 = ssub.s32 %s1953_s16, %s2360_s18 }
  0x44   : > { %s2347_s27 = scalar_select %p2123_p7, 1, 0 }
  0x45   : > { %s197_s28 = sand.u32 1, %s1945_s14   ;;  %p46_p9 = scmp.eq.s32.totalorder %s43_s25, 0 }
  0x46   : > { %s1279_s29 = sshll.u32 %s197_s28, 8  ;;  %s1375_s30 = sshll.u32 %s1953_s16, 12 }
  0x47   : > { %s2132_s4 = scalar_select %p46_p9, %s1945_s14, %s48_s19  }
  0x48   : > { %s2137_s7 = scalar_lea.hbm %s2333_s0, %s1375_s30  ;;  %s201_s21 = scalar_lea.vmem [#allocation3], %s1279_s29 }
  0x49   : > { %s211_s8 = sshll.u32 %s201_s21, 4  ;;  %p2141_p2 = pnand %p1661_p3, %p57_p5  ;;  %s2145_s8 = int_to_ptr.vmem [resolvable:$true] %s211_s8 }
  0x4a   : > { %s2147_s9 = scalar_lea.sflag [#allocation4], %s197_s28  ;;  %s1841_s10 = scalar_lea.hbm %s2137_s7, 4096 }
  0x4b   : > { %p1842_p11 = scmp.ne.s32.totalorder %s2137_s7, %s1841_s10  ;;  %p1843_p12 = pneg %p2141_p2 }
  0x4c   : > { %s1846_s25 = scalar_lea.hbm %s2333_s0, 8192  ;;  %p1847_p4 = scmp.lt.u32.totalorder %s2137_s7, %s2333_s0 }
  0x4d   : > { %p1844_p0 = pnand %p1843_p12, %p1842_p11  ;;  %p1848_p13 = scmp.lt.u32.totalorder %s1846_s25, %s1841_s10 }
  0x4e   : > { %p1850_p10 = scmp.lt.u32.totalorder %s1841_s10, %s2137_s7 }
  0x4f   : > { %p1845_p1 = pneg %p1844_p0  ;;  %p1849_p6 = por %p1848_p13, %p1847_p4 }
  0x51   : > { %p1851_p3 = por %p1850_p10, %p1849_p6 }
  0x53   : > { %p1852_p5 = pnand %p1851_p3, %p1845_p1 }
  0x55   : > { %1855 = shalt.err (!%p1852_p5)
}
  0x56   : > { %s1856_s28 = scalar_lea.vmem %s2145_s8, 4096  ;;  %s1963_s5 = smov [#allocation3]  }
  0x57   : > { %p1857_p9 = scmp.ne.s32.totalorder %s2145_s8, %s1856_s28  ;;  %s1861_s6 = sshll.u32 %s1963_s5, 4  ;;  %s1862_s6 = int_to_ptr.vmem [resolvable:$false] %s1861_s6 }
  0x58   : > { %s1863_s21 = scalar_lea.vmem %s1862_s6, 8192  ;;  %p1864_p7 = scmp.lt.s32.totalorder %s2145_s8, %s1862_s6 }
  0x59   : > { %p1859_p11 = pnand %p1857_p9, %p1843_p12  ;;  %p1865_p4 = scmp.lt.s32.totalorder %s1863_s21, %s1856_s28 }
  0x5b   : > { %p1860_p0 = pneg %p1859_p11  ;;  %p1866_p13 = por %p1865_p4, %p1864_p7 }
  0x5d   : > { %p1867_p6 = pnand %p1866_p13, %p1860_p0 }
  0x5f   : > { %1870 = shalt.err (!%p1867_p6)
}
  0x60   : > { %s1964_s10 = smov 128   ;;  %s1965_s11 = smov 8  }
  0x61   : > { %1654 = dma.hbm_to_vmem [thread:$0]  (!%p2141_p2), %s2137_s7, 4096, %s2145_s8, %s2147_s9, %s1964_s10, %s1964_s10, %s1965_s11  }
  0x62   : > { %223 = sbr.rel (%p2043_p8) target bundleno = 437 (0x1b5), region = 32  ;;  %s2178_s19 = sand.u32 (!%p2043_p8), 1, %s1941_s13  }
  0x63   : > { %s1284_s25 = sshll.u32 (!%p2043_p8), %s2178_s19, 8  ;;  %s226_s29 = scalar_lea.sflag (!%p2043_p8), [#allocation4], %s2178_s19 }
  0x64   : > { %s2182_s30 = scalar_lea.vmem (!%p2043_p8), [#allocation3], %s1284_s25  ;;  %p2349_p7 = scmp.ne.s32.totalorder (!%p2043_p8), %s2343_s22, 0 }
  0x69   : > { %1924 = dma.done.wait (%p2349_p7), %s226_s29, 4096  }
  0x6a   : > { %1926 = vsyncadd (%p2349_p7), %s226_s29, 4294963200  ;;  %p2350_p2 = scmp.ne.s32.totalorder %s2341_s20, 0 }
  0x6c   : > { %1928 = dma.done.wait (%p2350_p2), [#allocation7], 2064  }
  0x6d   : > { %1930 = vsyncadd (%p2350_p2), [#allocation7], 4294965232  ;;  %v1721_v0 = vld [vmem:[#allocation6 + $0x40] sm:$0xff]   ;;  %v1723_v2 = vld [vmem:[#allocation6 + $0x48] sm:$0xff]   ;;  %s1287_s20 = sshll.u32 %s2178_s19, 7  ;;  %s1408_s24 = sshll.u32 %s1949_s15, 11 }
  0x6e   : > { %v1722_v1 = vld [vmem:[#allocation6] sm:$0xff]   ;;  %1504 = vmatprep.subr.bf16.mxu0 %v1721_v0  ;;  %1616 = vmatprep.subr.bf16.mxu1 %v1721_v0  ;;  %v1724_v3 = vld [vmem:[#allocation6 + $0x8] sm:$0xff]   ;;  %v1725_v4 = vld [vmem:[#allocation6 + $0x50] sm:$0xff]   ;;  %s2231_s22 = scalar_lea.vmem [#allocation9], %s1287_s20  ;;  %s2280_s9 = scalar_lea.hbm %s2336_s3, %s1408_s24 }
  0x6f   : > { %1505 = vmatpush3.bf16.msra.mxu0 %v1722_v1  ;;  %1624 = vmatpush3.bf16.msra.mxu1 %v1722_v1  ;;  %v1726_v5 = vld [vmem:[#allocation6 + $0x10] sm:$0xff]   ;;  %v1727_v6 = vld [vmem:[#allocation6 + $0x58] sm:$0xff]   ;;  %v1729_v8 = vld [vmem:[#allocation6 + $0x60] sm:$0xff]   ;;  %s1159_s7 = sshll.u32 %s2231_s22, 4  ;;  %s1145_s15 = scalar_lea.sflag [#allocation5], %s2178_s19  ;;  %s2282_s7 = int_to_ptr.vmem [resolvable:$true] %s1159_s7 }
  0x70   : > { %1506 = vmatprep.subr.bf16.mxu0 %v1723_v2  ;;  %1617 = vmatprep.subr.bf16.mxu1 %v1723_v2  ;;  %v1728_v7 = vld [vmem:[#allocation6 + $0x18] sm:$0xff]   ;;  %v1730_v9 = vld [vmem:[#allocation6 + $0x20] sm:$0xff]   ;;  %v1731_v10 = vld [vmem:[#allocation6 + $0x68] sm:$0xff]   ;;  %s1871_s28 = scalar_lea.vmem %s2282_s7, 2048  ;;  %p2351_p12 = scmp.ne.s32.totalorder %s2347_s27, 0 }
  0x71   : > { %v1739_v11 = vld [vmem:[%s2182_s30 + $0x4] ss:$8 sps:$4 sm:$0xff]   ;;  %v1733_v14 = vld [vmem:[#allocation6 + $0x70] sm:$0xff]   ;;  %v1735_v16 = vld [vmem:[#allocation6 + $0x78] sm:$0xff]   ;;  %p1872_p8 = scmp.ne.s32.totalorder %s2282_s7, %s1871_s28  ;;  %s1966_s5 = smov [#allocation9]  }
  0x72   : > { %v1742_v12 = vld [vmem:[%s2182_s30 + $0x84] ss:$8 sps:$4 sm:$0xff]   ;;  %685 = vmatprep.mubr.bf16.mxu0 %v1739_v11  ;;  %v1734_v15 = vld [vmem:[#allocation6 + $0x30] sm:$0xff]   ;;  %v1736_v17 = vld [vmem:[#allocation6 + $0x38] sm:$0xff]   ;;  %s1875_s6 = sshll.u32 %s1966_s5, 4  ;;  %s1876_s6 = int_to_ptr.vmem [resolvable:$false] %s1875_s6 }
  0x73   : > { %1507 = vmatpush3.bf16.msra.mxu0 %v1724_v3  ;;  %1625 = vmatpush3.bf16.msra.mxu1 %v1724_v3  ;;  %v1732_v13 = vld [vmem:[#allocation6 + $0x28] sm:$0xff]   ;;  %v1743_v20 = vld [vmem:[%s2182_s30 + $0x14] ss:$8 sps:$4 sm:$0xff]   ;;  %v1747_v22 = vld [vmem:[%s2182_s30 + $0x10] ss:$8 sps:$4 sm:$0xff]   ;;  %p1873_p1 = pnand %p1872_p8, %p2351_p12  ;;  %s1877_s21 = scalar_lea.vmem %s1876_s6, 4096 }
  0x74   : > { %1508 = vmatprep.subr.bf16.mxu0 %v1725_v4  ;;  %1618 = vmatprep.subr.bf16.mxu1 %v1725_v4  ;;  %v1737_v18 = vld [vmem:[%s2182_s30] ss:$8 sps:$4 sm:$0xff]   ;;  %v1745_v21 = vld [vmem:[%s2182_s30 + $0x94] ss:$8 sps:$4 sm:$0xff]   ;;  %v1748_v23 = vld [vmem:[%s2182_s30 + $0x90] ss:$8 sps:$4 sm:$0xff]   ;;  %p1878_p3 = scmp.lt.s32.totalorder %s2282_s7, %s1876_s6  ;;  %p1879_p5 = scmp.lt.s32.totalorder %s1877_s21, %s1871_s28 }
  0x75   : > { %749 = vmatprep.mubr.bf16.mxu1 %v1742_v12  ;;  %v1740_v19 = vld [vmem:[%s2182_s30 + $0x80] ss:$8 sps:$4 sm:$0xff]   ;;  %v1749_v24 = vld [vmem:[%s2182_s30 + $0x24] ss:$8 sps:$4 sm:$0xff]   ;;  %v1755_v28 = vld [vmem:[%s2182_s30 + $0x34] ss:$8 sps:$4 sm:$0xff]   ;;  %p1874_p10 = pneg %p1873_p1 }
  0x76   : > { %v1751_v25 = vld [vmem:[%s2182_s30 + $0xa4] ss:$8 sps:$4 sm:$0xff]   ;;  %v1753_v26 = vld [vmem:[%s2182_s30 + $0x20] ss:$8 sps:$4 sm:$0xff]   ;;  %v1757_v29 = vld [vmem:[%s2182_s30 + $0xb4] ss:$8 sps:$4 sm:$0xff]   ;;  %p1880_p9 = por %p1879_p5, %p1878_p3 }
  0x77   : > { %1509 = vmatpush3.bf16.msra.mxu0 %v1726_v5  ;;  %1626 = vmatpush3.bf16.msra.mxu1 %v1726_v5  ;;  %v1754_v27 = vld [vmem:[%s2182_s30 + $0xa0] ss:$8 sps:$4 sm:$0xff]   ;;  %v1759_v30 = vld [vmem:[%s2182_s30 + $0x30] ss:$8 sps:$4 sm:$0xff]   ;;  %v1761_v32 = vld [vmem:[%s2182_s30 + $0x44] ss:$8 sps:$4 sm:$0xff]  }
  0x78   : > { %1510 = vmatprep.subr.bf16.mxu0 %v1727_v6  ;;  %1619 = vmatprep.subr.bf16.mxu1 %v1727_v6  ;;  %v1760_v31 = vld [vmem:[%s2182_s30 + $0xb0] ss:$8 sps:$4 sm:$0xff]   ;;  %v1763_v33 = vld [vmem:[%s2182_s30 + $0xc4] ss:$8 sps:$4 sm:$0xff]   ;;  %v1765_v34 = vld [vmem:[%s2182_s30 + $0x40] ss:$8 sps:$4 sm:$0xff]   ;;  %p1881_p11 = pnand %p1880_p9, %p1874_p10 }
  0x79   : > { %v1766_v35 = vld [vmem:[%s2182_s30 + $0xc0] ss:$8 sps:$4 sm:$0xff]   ;;  %v1767_v36 = vld [vmem:[%s2182_s30 + $0x54] ss:$8 sps:$4 sm:$0xff]   ;;  %v1771_v38 = vld [vmem:[%s2182_s30 + $0x50] ss:$8 sps:$4 sm:$0xff]  }
  0x7a   : > { %v1769_v37 = vld [vmem:[%s2182_s30 + $0xd4] ss:$8 sps:$4 sm:$0xff]   ;;  %v1772_v39 = vld [vmem:[%s2182_s30 + $0xd0] ss:$8 sps:$4 sm:$0xff]   ;;  %v1773_v40 = vld [vmem:[%s2182_s30 + $0x64] ss:$8 sps:$4 sm:$0xff]  }
  0x7b   : > { %1511 = vmatpush3.bf16.msra.mxu0 %v1728_v7  ;;  %1627 = vmatpush3.bf16.msra.mxu1 %v1728_v7  ;;  %v1775_v41 = vld [vmem:[%s2182_s30 + $0xe4] ss:$8 sps:$4 sm:$0xff]   ;;  %v1777_v42 = vld [vmem:[%s2182_s30 + $0x60] ss:$8 sps:$4 sm:$0xff]   ;;  %v1779_v44 = vld [vmem:[%s2182_s30 + $0x74] ss:$8 sps:$4 sm:$0xff]  }
  0x7c   : > { %1512 = vmatprep.subr.bf16.mxu0 %v1729_v8  ;;  %1620 = vmatprep.subr.bf16.mxu1 %v1729_v8  ;;  %v1778_v43 = vld [vmem:[%s2182_s30 + $0xe0] ss:$8 sps:$4 sm:$0xff]   ;;  %v1781_v45 = vld [vmem:[%s2182_s30 + $0xf4] ss:$8 sps:$4 sm:$0xff]   ;;  %v1783_v46 = vld [vmem:[%s2182_s30 + $0x70] ss:$8 sps:$4 sm:$0xff]  }
  0x7d   : > { %v1784_v47 = vld [vmem:[%s2182_s30 + $0xf0] ss:$8 sps:$4 sm:$0xff]   ;;  %v2224_v51 = vld [vmem:[#allocation8] ss:$0 sm:$0xff] }
  0x7f   : > { %1513 = vmatpush3.bf16.msra.mxu0 %v1730_v9  ;;  %1628 = vmatpush3.bf16.msra.mxu1 %v1730_v9 }
  0x80   : > { %1514 = vmatprep.subr.bf16.mxu0 %v1731_v10  ;;  %1621 = vmatprep.subr.bf16.mxu1 %v1731_v10 }
  0x83   : > { %1515 = vmatpush3.bf16.msra.mxu0 %v1732_v13  ;;  %1629 = vmatpush3.bf16.msra.mxu1 %v1732_v13 }
  0x84   : > { %1516 = vmatprep.subr.bf16.mxu0 %v1733_v14  ;;  %1622 = vmatprep.subr.bf16.mxu1 %v1733_v14 }
  0x87   : > { %1517 = vmatpush3.bf16.msra.mxu0 %v1734_v15  ;;  %1630 = vmatpush3.bf16.msra.mxu1 %v1734_v15 }
  0x88   : > { %1518 = vmatprep.subr.bf16.mxu0 %v1735_v16  ;;  %1623 = vmatprep.subr.bf16.mxu1 %v1735_v16 }
  0x8b   : > { %1519 = vmatpush3.bf16.msra.mxu0 %v1736_v17  ;;  %1631 = vmatpush3.bf16.msra.mxu1 %v1736_v17 }
  0x8e   : > { %686 = vmatmul.mubr.bf16.vlgmr.msra.gmra.mrb[0].mxu0 %v1737_v18  ;;  %750 = vmatmul.mubr.bf16.vlgmr.msra.gmra.mrb[0].mxu1 %v1740_v19 }
  0x8f   : > { %693 = vmatprep.mubr.bf16.mxu0 %v1743_v20  ;;  %757 = vmatprep.mubr.bf16.mxu1 %v1745_v21 }
  0x96   : > { %694 = vmatmul.mubr.bf16.gmra.mrb[4].mxu0 %v1747_v22  ;;  %758 = vmatmul.mubr.bf16.gmra.mrb[4].mxu1 %v1748_v23 }
  0x97   : > { %701 = vmatprep.mubr.bf16.mxu0 %v1749_v24  ;;  %765 = vmatprep.mubr.bf16.mxu1 %v1751_v25 }
  0x9e   : > { %702 = vmatmul.mubr.bf16.gmra.mrb[8].mxu0 %v1753_v26  ;;  %766 = vmatmul.mubr.bf16.gmra.mrb[8].mxu1 %v1754_v27 }
  0x9f   : > { %709 = vmatprep.mubr.bf16.mxu0 %v1755_v28  ;;  %773 = vmatprep.mubr.bf16.mxu1 %v1757_v29 }
  0xa6   : > { %710 = vmatmul.mubr.bf16.gmra.mrb[12].mxu0 %v1759_v30  ;;  %774 = vmatmul.mubr.bf16.gmra.mrb[12].mxu1 %v1760_v31 }
  0xa7   : > { %717 = vmatprep.mubr.bf16.mxu0 %v1761_v32  ;;  %781 = vmatprep.mubr.bf16.mxu1 %v1763_v33 }
  0xae   : > { %718 = vmatmul.mubr.bf16.gmra.mrb[16].mxu0 %v1765_v34  ;;  %782 = vmatmul.mubr.bf16.gmra.mrb[16].mxu1 %v1766_v35 }
  0xaf   : > { %725 = vmatprep.mubr.bf16.mxu0 %v1767_v36  ;;  %789 = vmatprep.mubr.bf16.mxu1 %v1769_v37 }
  0xb6   : > { %726 = vmatmul.mubr.bf16.gmra.mrb[20].mxu0 %v1771_v38  ;;  %790 = vmatmul.mubr.bf16.gmra.mrb[20].mxu1 %v1772_v39 }
  0xb7   : > { %733 = vmatprep.mubr.bf16.mxu0 %v1773_v40  ;;  %797 = vmatprep.mubr.bf16.mxu1 %v1775_v41 }
  0xbe   : > { %734 = vmatmul.mubr.bf16.gmra.mrb[24].mxu0 %v1777_v42  ;;  %798 = vmatmul.mubr.bf16.gmra.mrb[24].mxu1 %v1778_v43 }
  0xbf   : > { %741 = vmatprep.mubr.bf16.mxu0 %v1779_v44  ;;  %805 = vmatprep.mubr.bf16.mxu1 %v1781_v45 }
  0xc6   : > { %742 = vmatmul.mubr.bf16.gmra.mrb[28].mxu0 %v1783_v46  ;;  %806 = vmatmul.mubr.bf16.gmra.mrb[28].mxu1 %v1784_v47 }
 0x161   : > { %v1520_v48 = vpop.f32.mrb[0].mxu0  ;;  %v1568_v49 = vpop.f32.mrb[0].mxu1 }
 0x162   : > { %v1521_v50 = vpop.f32.mrb[1].mxu0  ;;  %v1569_v52 = vpop.f32.mrb[1].mxu1 }
 0x163   : > { %v1522_v53 = vadd.f32 %v1521_v50, %v1520_v48  ;;  %v1570_v54 = vadd.f32 %v1569_v52, %v1568_v49  ;;  %v1523_v55 = vpop.f32.mrb[2].mxu0  ;;  %v1571_v56 = vpop.f32.mrb[2].mxu1 }
 0x164   : > { %v1524_v57 = vpop.f32.mrb[3].mxu0  ;;  %v1572_v58 = vpop.f32.mrb[3].mxu1 }
 0x165   : > { %v920_v59 = vadd.f32 %v1522_v53, %v2224_v51  ;;  %v936_v60 = vadd.f32 %v1570_v54, %v2224_v51  ;;  %v1525_v61 = vadd.f32 %v1524_v57, %v1523_v55  ;;  %v1573_v62 = vadd.f32 %v1572_v58, %v1571_v56 }
 0x167   : > { %v921_v63 = vadd.f32 %v1525_v61, %v2224_v51  ;;  %v937_v0 = vadd.f32 %v1573_v62, %v2224_v51  ;;  %v952_v1 = vmax.f32 %v920_v59, 0.0  ;;  %v968_v2 = vmax.f32 %v936_v60, 0.0 }
 0x169   : > { %v953_v3 = vmax.f32 %v921_v63, 0.0  ;;  %v969_v4 = vmax.f32 %v937_v0, 0.0  ;;  %v1526_v5 = vpop.f32.mrb[4].mxu0  ;;  %v1574_v6 = vpop.f32.mrb[4].mxu1 }
 0x16a   : > { %v1527_v7 = vpop.f32.mrb[5].mxu0  ;;  %v1575_v8 = vpop.f32.mrb[5].mxu1 }
 0x16b   : > { %v1412_v9 = vpack.c.bf16 %v953_v3, %v952_v1  ;;  %v1452_v10 = vpack.c.bf16 %v969_v4, %v968_v2  ;;  %v1528_v11 = vadd.f32 %v1527_v7, %v1526_v5  ;;  %v1576_v12 = vadd.f32 %v1575_v8, %v1574_v6  ;;  %v1529_v13 = vpop.f32.mrb[6].mxu0  ;;  %v1577_v14 = vpop.f32.mrb[6].mxu1 }
 0x16c   : > { %v1530_v15 = vpop.f32.mrb[7].mxu0  ;;  %v1578_v16 = vpop.f32.mrb[7].mxu1 }
 0x16d   : > { %1413 = vst [vmem:[%s2231_s22] sm:$0xff] %v1412_v9   ;;  %1496 = vst [vmem:[%s2231_s22 + $0x40] sm:$0xff] %v1452_v10   ;;  %v922_v17 = vadd.f32 %v1528_v11, %v2224_v51  ;;  %v938_v18 = vadd.f32 %v1576_v12, %v2224_v51  ;;  %v1531_v19 = vadd.f32 %v1530_v15, %v1529_v13 }
 0x16e   : > { %v1579_v20 = vadd.f32 %v1578_v16, %v1577_v14 }
 0x16f   : > { %v923_v21 = vadd.f32 %v1531_v19, %v2224_v51  ;;  %v954_v23 = vmax.f32 %v922_v17, 0.0  ;;  %v970_v24 = vmax.f32 %v938_v18, 0.0 }
 0x170   : > { %v939_v22 = vadd.f32 %v1579_v20, %v2224_v51 }
 0x171   : > { %v955_v25 = vmax.f32 %v923_v21, 0.0  ;;  %v1532_v27 = vpop.f32.mrb[8].mxu0  ;;  %v1580_v28 = vpop.f32.mrb[8].mxu1 }
 0x172   : > { %v971_v26 = vmax.f32 %v939_v22, 0.0  ;;  %v1533_v29 = vpop.f32.mrb[9].mxu0  ;;  %v1581_v30 = vpop.f32.mrb[9].mxu1 }
 0x173   : > { %v1417_v31 = vpack.c.bf16 %v955_v25, %v954_v23  ;;  %v1534_v33 = vadd.f32 %v1533_v29, %v1532_v27  ;;  %v1582_v34 = vadd.f32 %v1581_v30, %v1580_v28  ;;  %v1535_v35 = vpop.f32.mrb[10].mxu0  ;;  %v1583_v36 = vpop.f32.mrb[10].mxu1 }
 0x174   : > { %v1457_v32 = vpack.c.bf16 %v971_v26, %v970_v24  ;;  %v1536_v37 = vpop.f32.mrb[11].mxu0  ;;  %v1584_v38 = vpop.f32.mrb[11].mxu1 }
 0x175   : > { %1489 = vst [vmem:[%s2231_s22 + $0x8] sm:$0xff] %v1417_v31   ;;  %v924_v39 = vadd.f32 %v1534_v33, %v2224_v51  ;;  %v940_v40 = vadd.f32 %v1582_v34, %v2224_v51  ;;  %v1537_v41 = vadd.f32 %v1536_v37, %v1535_v35  ;;  %v1585_v42 = vadd.f32 %v1584_v38, %v1583_v36 }
 0x176   : > { %1497 = vst [vmem:[%s2231_s22 + $0x48] sm:$0xff] %v1457_v32  }
 0x177   : > { %v925_v43 = vadd.f32 %v1537_v41, %v2224_v51  ;;  %v941_v44 = vadd.f32 %v1585_v42, %v2224_v51  ;;  %v956_v45 = vmax.f32 %v924_v39, 0.0  ;;  %v972_v46 = vmax.f32 %v940_v40, 0.0 }
 0x179   : > { %v957_v47 = vmax.f32 %v925_v43, 0.0  ;;  %v973_v48 = vmax.f32 %v941_v44, 0.0  ;;  %v1538_v49 = vpop.f32.mrb[12].mxu0  ;;  %v1586_v50 = vpop.f32.mrb[12].mxu1 }
 0x17a   : > { %v1539_v52 = vpop.f32.mrb[13].mxu0  ;;  %v1587_v53 = vpop.f32.mrb[13].mxu1 }
 0x17b   : > { %v1422_v54 = vpack.c.bf16 %v957_v47, %v956_v45  ;;  %v1462_v55 = vpack.c.bf16 %v973_v48, %v972_v46  ;;  %v1540_v56 = vadd.f32 %v1539_v52, %v1538_v49  ;;  %v1588_v57 = vadd.f32 %v1587_v53, %v1586_v50  ;;  %v1541_v58 = vpop.f32.mrb[14].mxu0  ;;  %v1589_v59 = vpop.f32.mrb[14].mxu1 }
 0x17c   : > { %v1542_v60 = vpop.f32.mrb[15].mxu0  ;;  %v1590_v61 = vpop.f32.mrb[15].mxu1 }
 0x17d   : > { %1490 = vst [vmem:[%s2231_s22 + $0x10] sm:$0xff] %v1422_v54   ;;  %1498 = vst [vmem:[%s2231_s22 + $0x50] sm:$0xff] %v1462_v55   ;;  %v926_v62 = vadd.f32 %v1540_v56, %v2224_v51  ;;  %v942_v63 = vadd.f32 %v1588_v57, %v2224_v51  ;;  %v1543_v0 = vadd.f32 %v1542_v60, %v1541_v58 }
 0x17e   : > { %v1591_v1 = vadd.f32 %v1590_v61, %v1589_v59 }
 0x17f   : > { %v927_v2 = vadd.f32 %v1543_v0, %v2224_v51  ;;  %v958_v4 = vmax.f32 %v926_v62, 0.0  ;;  %v974_v5 = vmax.f32 %v942_v63, 0.0 }
 0x180   : > { %v943_v3 = vadd.f32 %v1591_v1, %v2224_v51 }
 0x181   : > { %v959_v6 = vmax.f32 %v927_v2, 0.0  ;;  %v1544_v8 = vpop.f32.mrb[16].mxu0  ;;  %v1592_v9 = vpop.f32.mrb[16].mxu1 }
 0x182   : > { %v975_v7 = vmax.f32 %v943_v3, 0.0  ;;  %v1545_v10 = vpop.f32.mrb[17].mxu0  ;;  %v1593_v11 = vpop.f32.mrb[17].mxu1 }
 0x183   : > { %v1427_v12 = vpack.c.bf16 %v959_v6, %v958_v4  ;;  %v1546_v14 = vadd.f32 %v1545_v10, %v1544_v8  ;;  %v1594_v15 = vadd.f32 %v1593_v11, %v1592_v9  ;;  %v1547_v16 = vpop.f32.mrb[18].mxu0  ;;  %v1595_v17 = vpop.f32.mrb[18].mxu1 }
 0x184   : > { %v1467_v13 = vpack.c.bf16 %v975_v7, %v974_v5  ;;  %v1548_v18 = vpop.f32.mrb[19].mxu0  ;;  %v1596_v19 = vpop.f32.mrb[19].mxu1 }
 0x185   : > { %1491 = vst [vmem:[%s2231_s22 + $0x18] sm:$0xff] %v1427_v12   ;;  %v928_v20 = vadd.f32 %v1546_v14, %v2224_v51  ;;  %v944_v21 = vadd.f32 %v1594_v15, %v2224_v51  ;;  %v1549_v22 = vadd.f32 %v1548_v18, %v1547_v16  ;;  %v1597_v23 = vadd.f32 %v1596_v19, %v1595_v17 }
 0x186   : > { %1499 = vst [vmem:[%s2231_s22 + $0x58] sm:$0xff] %v1467_v13  }
 0x187   : > { %v929_v24 = vadd.f32 %v1549_v22, %v2224_v51  ;;  %v945_v25 = vadd.f32 %v1597_v23, %v2224_v51  ;;  %v960_v26 = vmax.f32 %v928_v20, 0.0  ;;  %v976_v27 = vmax.f32 %v944_v21, 0.0 }
 0x189   : > { %v961_v28 = vmax.f32 %v929_v24, 0.0  ;;  %v977_v29 = vmax.f32 %v945_v25, 0.0  ;;  %v1550_v30 = vpop.f32.mrb[20].mxu0  ;;  %v1598_v31 = vpop.f32.mrb[20].mxu1 }
 0x18a   : > { %v1551_v32 = vpop.f32.mrb[21].mxu0  ;;  %v1599_v33 = vpop.f32.mrb[21].mxu1 }
 0x18b   : > { %v1432_v34 = vpack.c.bf16 %v961_v28, %v960_v26  ;;  %v1472_v35 = vpack.c.bf16 %v977_v29, %v976_v27  ;;  %v1552_v36 = vadd.f32 %v1551_v32, %v1550_v30  ;;  %v1600_v37 = vadd.f32 %v1599_v33, %v1598_v31  ;;  %v1553_v38 = vpop.f32.mrb[22].mxu0  ;;  %v1601_v39 = vpop.f32.mrb[22].mxu1 }
 0x18c   : > { %v1554_v40 = vpop.f32.mrb[23].mxu0  ;;  %v1602_v41 = vpop.f32.mrb[23].mxu1 }
 0x18d   : > { %1492 = vst [vmem:[%s2231_s22 + $0x20] sm:$0xff] %v1432_v34   ;;  %1500 = vst [vmem:[%s2231_s22 + $0x60] sm:$0xff] %v1472_v35   ;;  %v930_v42 = vadd.f32 %v1552_v36, %v2224_v51  ;;  %v946_v43 = vadd.f32 %v1600_v37, %v2224_v51  ;;  %v1555_v44 = vadd.f32 %v1554_v40, %v1553_v38 }
 0x18e   : > { %v1603_v45 = vadd.f32 %v1602_v41, %v1601_v39 }
 0x18f   : > { %v931_v46 = vadd.f32 %v1555_v44, %v2224_v51  ;;  %v962_v48 = vmax.f32 %v930_v42, 0.0  ;;  %v978_v49 = vmax.f32 %v946_v43, 0.0 }
 0x190   : > { %v947_v47 = vadd.f32 %v1603_v45, %v2224_v51 }
 0x191   : > { %v963_v50 = vmax.f32 %v931_v46, 0.0  ;;  %v1556_v53 = vpop.f32.mrb[24].mxu0  ;;  %v1604_v54 = vpop.f32.mrb[24].mxu1 }
 0x192   : > { %v979_v52 = vmax.f32 %v947_v47, 0.0  ;;  %v1557_v55 = vpop.f32.mrb[25].mxu0  ;;  %v1605_v56 = vpop.f32.mrb[25].mxu1 }
 0x193   : > { %v1437_v57 = vpack.c.bf16 %v963_v50, %v962_v48  ;;  %v1558_v59 = vadd.f32 %v1557_v55, %v1556_v53  ;;  %v1606_v60 = vadd.f32 %v1605_v56, %v1604_v54  ;;  %v1559_v61 = vpop.f32.mrb[26].mxu0  ;;  %v1607_v62 = vpop.f32.mrb[26].mxu1 }
 0x194   : > { %v1477_v58 = vpack.c.bf16 %v979_v52, %v978_v49  ;;  %v1560_v63 = vpop.f32.mrb[27].mxu0  ;;  %v1608_v0 = vpop.f32.mrb[27].mxu1 }
 0x195   : > { %1493 = vst [vmem:[%s2231_s22 + $0x28] sm:$0xff] %v1437_v57   ;;  %v932_v1 = vadd.f32 %v1558_v59, %v2224_v51  ;;  %v948_v2 = vadd.f32 %v1606_v60, %v2224_v51  ;;  %v1561_v3 = vadd.f32 %v1560_v63, %v1559_v61  ;;  %v1609_v4 = vadd.f32 %v1608_v0, %v1607_v62 }
 0x196   : > { %1501 = vst [vmem:[%s2231_s22 + $0x68] sm:$0xff] %v1477_v58  }
 0x197   : > { %v933_v5 = vadd.f32 %v1561_v3, %v2224_v51  ;;  %v949_v6 = vadd.f32 %v1609_v4, %v2224_v51  ;;  %v964_v7 = vmax.f32 %v932_v1, 0.0  ;;  %v980_v8 = vmax.f32 %v948_v2, 0.0 }
 0x199   : > { %v965_v9 = vmax.f32 %v933_v5, 0.0  ;;  %v981_v10 = vmax.f32 %v949_v6, 0.0  ;;  %v1562_v11 = vpop.f32.mrb[28].mxu0  ;;  %v1610_v12 = vpop.f32.mrb[28].mxu1 }
 0x19a   : > { %v1563_v13 = vpop.f32.mrb[29].mxu0  ;;  %v1611_v14 = vpop.f32.mrb[29].mxu1 }
 0x19b   : > { %v1442_v15 = vpack.c.bf16 %v965_v9, %v964_v7  ;;  %v1482_v16 = vpack.c.bf16 %v981_v10, %v980_v8  ;;  %v1564_v17 = vadd.f32 %v1563_v13, %v1562_v11  ;;  %v1612_v18 = vadd.f32 %v1611_v14, %v1610_v12  ;;  %v1565_v19 = vpop.f32.mrb[30].mxu0  ;;  %v1613_v20 = vpop.f32.mrb[30].mxu1 }
 0x19c   : > { %v1566_v21 = vpop.f32.mrb[31].mxu0  ;;  %v1614_v22 = vpop.f32.mrb[31].mxu1 }
 0x19d   : > { %1494 = vst [vmem:[%s2231_s22 + $0x30] sm:$0xff] %v1442_v15   ;;  %1502 = vst [vmem:[%s2231_s22 + $0x70] sm:$0xff] %v1482_v16   ;;  %v934_v23 = vadd.f32 %v1564_v17, %v2224_v51  ;;  %v950_v24 = vadd.f32 %v1612_v18, %v2224_v51  ;;  %v1567_v25 = vadd.f32 %v1566_v21, %v1565_v19 }
 0x19e   : > { %v1615_v26 = vadd.f32 %v1614_v22, %v1613_v20 }
 0x19f   : > { %v935_v27 = vadd.f32 %v1567_v25, %v2224_v51  ;;  %v966_v29 = vmax.f32 %v934_v23, 0.0  ;;  %v982_v30 = vmax.f32 %v950_v24, 0.0 }
 0x1a0   : > { %v951_v28 = vadd.f32 %v1615_v26, %v2224_v51 }
 0x1a1   : > { %v967_v31 = vmax.f32 %v935_v27, 0.0 }
 0x1a2   : > { %v983_v32 = vmax.f32 %v951_v28, 0.0 }
 0x1a3   : > { %v1447_v33 = vpack.c.bf16 %v967_v31, %v966_v29 }
 0x1a4   : > { %v1487_v34 = vpack.c.bf16 %v983_v32, %v982_v30 }
 0x1a5   : > { %1495 = vst [vmem:[%s2231_s22 + $0x38] sm:$0xff] %v1447_v33  }
 0x1a6   : > { %1503 = vst [vmem:[%s2231_s22 + $0x78] sm:$0xff] %v1487_v34  }
 0x1a7   : > { %1884 = shalt.err (!%p1881_p11)
}
 0x1a8   : > { %s1885_s10 = scalar_lea.hbm %s2280_s9, 2048  ;;  %s1889_s29 = scalar_lea.hbm %s2336_s3, 4096 }
 0x1a9   : > { %p1886_p0 = scmp.ne.s32.totalorder %s2280_s9, %s1885_s10  ;;  %p1890_p6 = scmp.lt.u32.totalorder %s2280_s9, %s2336_s3 }
 0x1aa   : > { %p1891_p7 = scmp.lt.u32.totalorder %s1889_s29, %s1885_s10  ;;  %p1893_p8 = scmp.lt.u32.totalorder %s1885_s10, %s2280_s9 }
 0x1ab   : > { %p1887_p4 = pnand %p1886_p0, %p2351_p12 }
 0x1ac   : > { %p1892_p2 = por %p1891_p7, %p1890_p6 }
 0x1ad   : > { %p1888_p13 = pneg %p1887_p4 }
 0x1ae   : > { %p1894_p1 = por %p1893_p8, %p1892_p2 }
 0x1b0   : > { %p1895_p10 = pnand %p1894_p1, %p1888_p13 }
 0x1b2   : > { %1898 = shalt.err (!%p1895_p10)
}
 0x1b3   : > { %s1967_s22 = smov 64   ;;  %s1968_s24 = smov 4  }
 0x1b4   : > { %1642 = dma.vmem_to_hbm [thread:$0]  (%p2351_p12), %s2282_s7, 2048, %s2280_s9, %s1145_s15, %s1967_s22, %s1967_s22, %s1968_s24  }
 0x1b5 PF: > { %s1174_s8 = sand.u32 1, %s1937_s12   ;;  %p2352_p3 = scmp.ne.s32.totalorder %s2344_s23, 0 }
 0x1b6   : > { %p2353_p5 = scmp.ge.s32.totalorder %s1957_s17, 2  ;;  %s1175_s26 = scalar_lea.sflag [#allocation5], %s1174_s8 }
 0x1b8   : > { %p1656_p9 = pnand %p2353_p5, %p2352_p3 }
 0x1ba   : > { %1932 = dma.done.wait (!%p1656_p9), %s1175_s26, 2048  }
 0x1bb   : > { %1934 = vsyncadd (!%p1656_p9), %s1175_s26, 4294965248  ;;  %s20_s17 = sadd.s32 1, %s1957_s17   ;;  %s2354_s12 = smov %s1941_s13 }
 0x1bc   : > { %p17_p11 = scmp.ge.s32.totalorder %s20_s17, 4   ;;  %s2355_s13 = smov %s1945_s14 }
 0x1bd   : > { %s2356_s14 = smov %s2132_s4  ;;  %s2357_s15 = smov %s1953_s16 }
 0x1be   : > { %s2358_s16 = smov %s2360_s18  ;;  %19 = sbr.rel (!%p17_p11) target bundleno = 7 (0x7), region = 95 }
 0x1c5   :  { %1180 = vsyncpa [#allocation4], 1 }
 0x1c6   :  { %1182 = vsyncpa [#allocation4 + $0x1], 1 }
 0x1c7   :  { %1183 = vsyncpa [#allocation7], 1 }
 0x1c8   :  { %1184 = vsyncpa [#allocation5], 1 }
 0x1c9   :  { %1186 = vsyncpa [#allocation5 + $0x1], 1 }

</bundles_post_ra>
